<compile_context>
chip_gen: v6e
topology: v6e:2x2x1
jax: 0.10.0
libtpu: 0.0.40
codegen_flags: <defaults>
</compile_context>

<pallas_src>
import jax
import jax.numpy as jnp
from jax.experimental import pallas as pl
from jax.experimental.pallas import tpu as pltpu

_LANE = 1024                      # lane-dense slab width (multiple of 128 -> unmasked vst)
_SUBLANE = 8                      # sublane tiling granularity
_BLOCK_BYTES = 4 * 1024 * 1024    # per-block footprint (input OR output)
_VMEM_LIMIT = 32 * 1024 * 1024    # > 2 bufs * 2 arrays * _BLOCK_BYTES, safe on v5e/v6e/v7x


def _silu_kernel(x_ref, o_ref):
    x = x_ref[...].astype(jnp.float32)
    # sigmoid(x) = 0.5 * tanh(0.5 * x) + 0.5  -> single EUP op, rest on VPU.
    sig = 0.5 * jnp.tanh(0.5 * x) + 0.5
    o_ref[...] = (x * sig).astype(o_ref.dtype)


def silu_pallas(x: jax.Array, *, block_bytes: int = _BLOCK_BYTES) -> jax.Array:
    """Elementwise x * sigmoid(x); preserves shape and dtype of x."""
    orig_shape = x.shape
    dtype = x.dtype
    n = x.size
    itemsize = jnp.dtype(dtype).itemsize

    # Rows of the (rows, 1024) slab, rounded up to a multiple of 8 sublanes.
    rows = pl.cdiv(n, _LANE)
    rows = pl.cdiv(rows, _SUBLANE) * _SUBLANE
    padded = rows * _LANE

    # Block rows: ~block_bytes per buffer, multiple of 8, capped at total rows.
    tr = max(_SUBLANE, (block_bytes // (_LANE * itemsize)) // _SUBLANE * _SUBLANE)
    tr = min(tr, rows)

    # Partial final block is masked by Pallas -> no rounding of rows to tr.
    grid_rows = pl.cdiv(rows, tr)

    x_flat = jnp.reshape(x, (-1,))
    if padded != n:
        # Slow path: only when n % (8 * 1024) != 0 (pad is at most 8K elems,
        # but the pad/slice each cost an extra HBM pass).
        x_flat = jnp.pad(x_flat, (0, padded - n))
    x2d = jnp.reshape(x_flat, (rows, _LANE))

    out2d = pl.pallas_call(
        _silu_kernel,
        out_shape=jax.ShapeDtypeStruct((rows, _LANE), dtype),
        grid_spec=pl.GridSpec(
            grid=(grid_rows,),
            in_specs=[pl.BlockSpec((tr, _LANE), lambda i: (i, 0))],
            out_specs=pl.BlockSpec((tr, _LANE), lambda i: (i, 0)),
        ),
        input_output_aliases={0: 0},
        compiler_params=pltpu.CompilerParams(
            dimension_semantics=("parallel",),
            vmem_limit_bytes=_VMEM_LIMIT,
        ),
        cost_estimate=pl.CostEstimate(
            flops=3 * n,
            transcendentals=n,
            bytes_accessed=2 * n * itemsize),
    )(x2d)

    out_flat = jnp.reshape(out2d, (-1,))
    if padded != n:
        out_flat = out_flat[:n]
    return jnp.reshape(out_flat, orig_shape)


if __name__ == "__main__":
    key = jax.random.PRNGKey(0)

    # Main test: small NCHW input consistent with the conv-style module.
    x = jax.random.normal(key, (2, 4, 16, 16), dtype=jnp.float32)
    y_ref = x * jax.nn.sigmoid(x)          # compute reference before the kernel
    y = jax.block_until_ready(silu_pallas(x))
    assert y.shape == x.shape and y.dtype == x.dtype
    assert jnp.allclose(y, y_ref, atol=1e-5, rtol=1e-5), "mismatch vs reference"

    # Second test: size is a multiple of 8*1024 -> exercises the zero-pad,
    # zero-copy fast path.
    x2 = jax.random.normal(jax.random.PRNGKey(1), (2, 4, 32, 32), dtype=jnp.float32)
    y2_ref = x2 * jax.nn.sigmoid(x2)
    y2 = jax.block_until_ready(silu_pallas(x2))
    assert y2.shape == x2.shape and y2.dtype == x2.dtype
    assert jnp.allclose(y2, y2_ref, atol=1e-5, rtol=1e-5), "mismatch vs reference (aligned)"

    print("KERNEL_OK")
</pallas_src>

<mosaic_0001>
module attributes {stable_mosaic.version = 11 : i64} {
  func.func @_silu_kernel(%arg0: i32, %arg1: memref<8x1024xf32, #tpu.memory_space<vmem>>, %arg2: memref<8x1024xf32, #tpu.memory_space<vmem>>) attributes {dimension_semantics = [#tpu.dimension_semantics<parallel>], iteration_bounds = array<i64: 1>, scalar_prefetch = 0 : i64, scratch_operands = 0 : i64, tpu.core_type = #tpu.core_type<tc>, window_params = [{transform_indices = @transform_0, window_bounds = array<i64: 8, 1024>}, {transform_indices = @transform_1, window_bounds = array<i64: 8, 1024>}]} {
    %c0 = arith.constant 0 : index
    %c0_0 = arith.constant 0 : index
    %0 = vector.load %arg1[%c0, %c0_0] : memref<8x1024xf32, #tpu.memory_space<vmem>>, vector<8x1024xf32>
    %cst = arith.constant 5.000000e-01 : f32
    %1 = vector.broadcast %cst : f32 to vector<8x1024xf32>
    %2 = arith.mulf %1, %0 : vector<8x1024xf32>
    %3 = math.tanh %2 : vector<8x1024xf32>
    %cst_1 = arith.constant 5.000000e-01 : f32
    %4 = vector.broadcast %cst_1 : f32 to vector<8x1024xf32>
    %5 = arith.mulf %4, %3 : vector<8x1024xf32>
    %cst_2 = arith.constant 5.000000e-01 : f32
    %6 = vector.broadcast %cst_2 : f32 to vector<8x1024xf32>
    %7 = arith.addf %5, %6 : vector<8x1024xf32>
    %8 = arith.mulf %0, %7 : vector<8x1024xf32>
    %c0_3 = arith.constant 0 : index
    %c0_4 = arith.constant 0 : index
    %9 = vector.load %arg2[%c0_3, %c0_4] : memref<8x1024xf32, #tpu.memory_space<vmem>>, vector<8x1024xf32>
    tpu.vector_store %arg2[%c0_3, %c0_4], %8 {strides = array<i32>} : memref<8x1024xf32, #tpu.memory_space<vmem>>, vector<8x1024xf32>,
    return
  }
  func.func @transform_0(%arg0: i32) -> (i32, i32) {
    %c0_i32 = arith.constant 0 : i32
    %c0_i32_0 = arith.constant 0 : i32
    return %arg0, %c0_i32 : i32, i32
  }
  func.func @transform_1(%arg0: i32) -> (i32, i32) {
    %c0_i32 = arith.constant 0 : i32
    %c0_i32_0 = arith.constant 0 : i32
    return %arg0, %c0_i32 : i32, i32
  }
}

</mosaic_0001>

<bundles_post_ra>
// kernel: tpu_custom_call.1
= control target key start
LH: loop header
LB: loop body
LE: loop exit
PB: predicated region body
PF: predicated region fallthrough
CT: control target
= control target key end

     0   :  { %6 = vsyncpa [#allocation3], 0  ;;  %s172_s0 = inlined_call_operand.hbm [shape: f32[8,1024], index: 0, kind: input, shape index: {}, may-alias: {0,1}]   ;;  %s173_s1 = inlined_call_operand.hbm [shape: f32[8,1024], index: 1, kind: output, shape index: {}, may-alias: {0,1}]  }
   0x1   :  { %7 = vsyncpa [#allocation4], 0  ;;  %s154_s6 = smov [#allocation2]  }
   0x2   :  { %s14_s7 = sshll.u32 %s154_s6, 4  ;;  %s15_s7 = int_to_ptr.vmem [resolvable:$true] %s14_s7 }
   0x3   :  { %s118_s8 = scalar_lea.vmem %s15_s7, 1024  ;;  %p123_p1 = scmp.lt.s32.totalorder %s15_s7, %s15_s7 }
   0x4   :  { %p119_p0 = scmp.ne.s32.totalorder %s15_s7, %s118_s8  ;;  %p124_p2 = scmp.lt.s32.totalorder %s118_s8, %s118_s8 }
   0x6   :  { %p125_p3 = por %p124_p2, %p123_p1 }
   0x8   :  { %p126_p4 = pnand %p125_p3, %p119_p0 }
   0xa   :  { %129 = shalt.err (!%p126_p4)
}
   0xb   :  { %17 = dma.hbm_to_vmem [thread:$0]  %s172_s0, 1024, %s15_s7, [#allocation3]  }
   0xc   :  { %150 = dma.done.wait [#allocation3], 1024  }
   0xd   :  { %151 = vsyncadd [#allocation3], 4294966272  ;;  %v21_v0 = vld [vmem:[#allocation2] sm:$0xff]  ;;  %v22_v1 = vld [vmem:[#allocation2 + $0x8] sm:$0xff]  ;;  %s155_s0 = smov [#allocation5]  }
   0xe   :  { %v23_v2 = vld [vmem:[#allocation2 + $0x10] sm:$0xff]  ;;  %v29_v3 = vmul.f32 0.5, %v21_v0  ;;  %v30_v4 = vmul.f32 0.5, %v22_v1  ;;  %v24_v6 = vld [vmem:[#allocation2 + $0x18] sm:$0xff]  ;;  %v25_v7 = vld [vmem:[#allocation2 + $0x20] sm:$0xff]  ;;  %s83_s11 = sshll.u32 %s155_s0, 4  ;;  %s84_s11 = int_to_ptr.vmem [resolvable:$true] %s83_s11 }
   0xf   :  { %v31_v5 = vmul.f32 0.5, %v23_v2  ;;  %v26_v8 = vld [vmem:[#allocation2 + $0x28] sm:$0xff]  ;;  %v32_v9 = vmul.f32 0.5, %v24_v6  ;;  %v27_v10 = vld [vmem:[#allocation2 + $0x30] sm:$0xff]  ;;  %v33_v11 = vmul.f32 0.5, %v25_v7  ;;  %v28_v12 = vld [vmem:[#allocation2 + $0x38] sm:$0xff]  ;;  %p135_p6 = scmp.lt.s32.totalorder %s84_s11, %s84_s11 }
  0x10   :  { %94 = vtanh.f32 %v29_v3  ;;  %v34_v13 = vmul.f32 0.5, %v26_v8  ;;  %v35_v14 = vmul.f32 0.5, %v27_v10  ;;  %v36_v15 = vmul.f32 0.5, %v28_v12  ;;  %s130_s12 = scalar_lea.vmem %s84_s11, 1024 }
  0x11   :  { %96 = vtanh.f32 %v30_v4  ;;  %p131_p5 = scmp.ne.s32.totalorder %s84_s11, %s130_s12  ;;  %p136_p7 = scmp.lt.s32.totalorder %s130_s12, %s130_s12 }
  0x12   :  { %98 = vtanh.f32 %v31_v5 }
  0x13   :  { %100 = vtanh.f32 %v32_v9  ;;  %p137_p8 = por %p136_p7, %p135_p6 }
  0x14   :  { %102 = vtanh.f32 %v33_v11 }
  0x15   :  { %104 = vtanh.f32 %v34_v13  ;;  %p138_p9 = pnand %p137_p8, %p131_p5 }
  0x16   :  { %106 = vtanh.f32 %v35_v14 }
  0x17   :  { %108 = vtanh.f32 %v36_v15 }
  0x1d   :  { %v95_v16 = vpop.eup %94 }
  0x1e   :  { %v97_v17 = vpop.eup %96  ;;  %v45_v18 = vmul.f32 0.5, %v95_v16 }
  0x1f   :  { %v99_v19 = vpop.eup %98  ;;  %v46_v20 = vmul.f32 0.5, %v97_v17 }
  0x20   :  { %v101_v21 = vpop.eup %100  ;;  %v53_v22 = vadd.f32 0.5, %v45_v18  ;;  %v47_v23 = vmul.f32 0.5, %v99_v19 }
  0x21   :  { %v103_v24 = vpop.eup %102  ;;  %v54_v25 = vadd.f32 0.5, %v46_v20  ;;  %v48_v26 = vmul.f32 0.5, %v101_v21 }
  0x22   :  { %v105_v27 = vpop.eup %104  ;;  %v61_v28 = vmul.f32 %v53_v22, %v21_v0  ;;  %v55_v29 = vadd.f32 0.5, %v47_v23  ;;  %v49_v30 = vmul.f32 0.5, %v103_v24 }
  0x23   :  { %v107_v31 = vpop.eup %106  ;;  %v62_v32 = vmul.f32 %v54_v25, %v22_v1  ;;  %v56_v33 = vadd.f32 0.5, %v48_v26  ;;  %v50_v34 = vmul.f32 0.5, %v105_v27 }
  0x24   :  { %v109_v35 = vpop.eup %108  ;;  %69 = vst [vmem:[#allocation5] sm:$0xff] %v61_v28  ;;  %v63_v36 = vmul.f32 %v55_v29, %v23_v2  ;;  %v57_v37 = vadd.f32 0.5, %v49_v30  ;;  %v51_v38 = vmul.f32 0.5, %v107_v31 }
  0x25   :  { %70 = vst [vmem:[#allocation5 + $0x8] sm:$0xff] %v62_v32  ;;  %v64_v39 = vmul.f32 %v56_v33, %v24_v6  ;;  %v58_v40 = vadd.f32 0.5, %v50_v34  ;;  %v52_v41 = vmul.f32 0.5, %v109_v35 }
  0x26   :  { %71 = vst [vmem:[#allocation5 + $0x10] sm:$0xff] %v63_v36  ;;  %v65_v42 = vmul.f32 %v57_v37, %v25_v7  ;;  %v59_v43 = vadd.f32 0.5, %v51_v38 }
  0x27   :  { %72 = vst [vmem:[#allocation5 + $0x18] sm:$0xff] %v64_v39  ;;  %v66_v44 = vmul.f32 %v58_v40, %v26_v8  ;;  %v60_v45 = vadd.f32 0.5, %v52_v41 }
  0x28   :  { %73 = vst [vmem:[#allocation5 + $0x20] sm:$0xff] %v65_v42  ;;  %v67_v46 = vmul.f32 %v59_v43, %v27_v10 }
  0x29   :  { %74 = vst [vmem:[#allocation5 + $0x28] sm:$0xff] %v66_v44  ;;  %v68_v47 = vmul.f32 %v60_v45, %v28_v12 }
  0x2a   :  { %75 = vst [vmem:[#allocation5 + $0x30] sm:$0xff] %v67_v46 }
  0x2b   :  { %76 = vst [vmem:[#allocation5 + $0x38] sm:$0xff] %v68_v47 }
  0x2c   :  { %141 = shalt.err (!%p138_p9)
}
  0x2d   :  { %86 = dma.vmem_to_hbm [thread:$0]  %s84_s11, 1024, %s173_s1, [#allocation4]  }
  0x2e   :  { %152 = dma.done.wait [#allocation4], 1024  }
  0x2f   :  { %153 = vsyncadd [#allocation4], 4294966272 }
  0x30   :  { %90 = vsyncpa [#allocation3], 1 }
  0x31   :  { %91 = vsyncpa [#allocation4], 1 }

</bundles_post_ra>
